<compile_context>
chip_gen: v7x
topology: tpu7x:2x2x1
jax: 0.10.0
libtpu: 0.0.40
codegen_flags: <defaults>
</compile_context>

<pallas_src>
import functools

import jax
import jax.numpy as jnp
from jax.experimental import pallas as pl
from jax.experimental.pallas import tpu as pltpu


def _cw_loss_rows(logits, tgt, margin):
    """Per-row CW loss column, (tile_b, 1) float32."""
    tb, C = logits.shape
    class_ids = jax.lax.broadcasted_iota(jnp.int32, (tb, C), 1)
    is_target = class_ids == tgt                                    # (tb, C)

    zero = jnp.zeros((), dtype=logits.dtype)
    neg_big = jnp.full((), -1000.0, dtype=logits.dtype)

    # self_loss  = logit at the target class (exactly one nonzero per row).
    self_col = jnp.sum(jnp.where(is_target, logits, zero),
                       axis=1, keepdims=True).astype(jnp.float32)   # (tb, 1)
    # other_loss = max_j((1 - onehot)*logits - onehot*1000)
    #            = max(max_{j != t} logits_j, -1000)
    other_col = jnp.max(jnp.where(is_target, neg_big, logits),
                        axis=1, keepdims=True).astype(jnp.float32)  # (tb, 1)

    # loss = -clamp(self - other + margin, min=0)
    return -jnp.maximum(self_col - other_col + jnp.float32(margin), 0.0)


def _cw_loss_mean_kernel(logits_ref, targets_ref, out_ref, acc_ref, *,
                         margin, true_b, tile_b, need_row_mask):
    i = pl.program_id(0)

    @pl.when(i == 0)
    def _():
        acc_ref[...] = jnp.zeros_like(acc_ref)

    loss = _cw_loss_rows(logits_ref[...], targets_ref[...], margin)  # (tb, 1)

    if need_row_mask:
        # Mask rows of the (possibly) partial last tile so they contribute 0.
        row_ids = i * tile_b + jax.lax.broadcasted_iota(jnp.int32, loss.shape, 0)
        loss = jnp.where(row_ids < true_b, loss, 0.0)

    acc_ref[...] += jnp.sum(loss, axis=0, keepdims=True)             # (1, 1) f32

    @pl.when(i == pl.num_programs(0) - 1)
    def _():
        out_ref[...] = acc_ref[...] * jnp.float32(1.0 / true_b)


def _cw_loss_rows_kernel(logits_ref, targets_ref, out_ref, *, margin):
    out_ref[...] = _cw_loss_rows(logits_ref[...], targets_ref[...], margin)


def cw_loss(logits, targets, *, num_classes, margin=50.0, reduce=True,
            tile_b=None):
    """Pallas TPU implementation of CWLoss.forward.

    logits:  (B, num_classes), any float dtype (kept native, no wrapper cast)
    targets: (B,) int
    returns: scalar f32 mean loss (reduce=True) or (B,) f32 per-sample loss.
    """
    B, C = logits.shape
    assert C == num_classes

    targets2d = targets.astype(jnp.int32).reshape(B, 1)

    itemsize = jnp.dtype(logits.dtype).itemsize
    sublane = max(8, 32 // max(itemsize, 1))      # 8 for f32, 16 for bf16
    lane = 128
    padded_c = ((C + lane - 1) // lane) * lane
    # VMEM bytes per row of ONE buffered copy of a tile: lane-padded logits
    # row + the 128-lane-padded int32 targets row.
    row_bytes = padded_c * itemsize + lane * 4

    if tile_b is None:
        # ~6 MiB per buffered copy (x2 for double buffering ~12 MiB), so the
        # pipeline stays well under the scoped VMEM limit on every generation
        # (incl. v7x's 64 MiB physical / ~32 MiB scoped VMEM).
        budget_bytes = 6 * 1024 * 1024
        max_rows = max(sublane, budget_bytes // row_bytes)
        tile_b = max(sublane, (min(max_rows, 1 << 15) // sublane) * sublane)
    if B <= tile_b:
        tile_b = B                                # single full-array block
    else:
        assert tile_b % sublane == 0, (tile_b, sublane)

    num_tiles = pl.cdiv(B, tile_b)

    padded_rows = ((tile_b + sublane - 1) // sublane) * sublane
    tile_vmem = padded_rows * row_bytes           # one buffered copy (padded)
    vmem_limit = int(min(max(2 * tile_vmem + (4 << 20), 16 << 20), 48 << 20))

    in_specs = [
        pl.BlockSpec((tile_b, C), lambda i: (i, 0)),   # logits rows
        pl.BlockSpec((tile_b, 1), lambda i: (i, 0)),   # targets column
    ]

    if reduce:
        kernel = functools.partial(
            _cw_loss_mean_kernel, margin=float(margin), true_b=B,
            tile_b=tile_b, need_row_mask=(B % tile_b != 0))
        # TODO(synk): on v7x the batch grid could additionally be split across
        # the two TensorCores (leading "parallel" axis + per-core partial
        # sums); kept as a single "arbitrary" reduction axis here.
        out = pl.pallas_call(
            kernel,
            out_shape=jax.ShapeDtypeStruct((1, 1), jnp.float32),
            grid_spec=pltpu.PrefetchScalarGridSpec(
                num_scalar_prefetch=0,
                grid=(num_tiles,),
                in_specs=in_specs,
                out_specs=pl.BlockSpec((1, 1), lambda i: (0, 0)),  # resident
                scratch_shapes=[pltpu.VMEM((1, 1), jnp.float32)],
            ),
            compiler_params=pltpu.CompilerParams(
                dimension_semantics=("arbitrary",),
                vmem_limit_bytes=vmem_limit,
            ),
        )(logits, targets2d)
        return out[0, 0]

    # Unreduced (per-sample) path: independent tiles, parallel grid.
    kernel = functools.partial(_cw_loss_rows_kernel, margin=float(margin))
    out = pl.pallas_call(
        kernel,
        out_shape=jax.ShapeDtypeStruct((B, 1), jnp.float32),
        grid_spec=pltpu.PrefetchScalarGridSpec(
            num_scalar_prefetch=0,
            grid=(num_tiles,),
            in_specs=in_specs,
            out_specs=pl.BlockSpec((tile_b, 1), lambda i: (i, 0)),
        ),
        compiler_params=pltpu.CompilerParams(
            dimension_semantics=("parallel",),
            vmem_limit_bytes=vmem_limit,
        ),
    )(logits, targets2d)
    return out[:, 0]


def _cw_loss_ref(logits, targets, *, num_classes, margin=50.0, reduce=True):
    onehot = jax.nn.one_hot(targets, num_classes, dtype=jnp.float32)
    logits = logits.astype(jnp.float32)
    self_loss = jnp.sum(onehot * logits, axis=1)
    other_loss = jnp.max((1.0 - onehot) * logits - onehot * 1000.0, axis=1)
    loss = -jnp.maximum(self_loss - other_loss + margin, 0.0)
    return jnp.mean(loss) if reduce else loss


if __name__ == "__main__":
    num_classes = 10
    margin = 50.0

    key = jax.random.PRNGKey(0)
    k1, k2, k3, k4 = jax.random.split(key, 4)

    # 1) Small shape, single full tile.
    batch = 8
    logits = jax.random.normal(k1, (batch, num_classes), dtype=jnp.float32) * 5.0
    targets = jax.random.randint(k2, (batch,), 0, num_classes, dtype=jnp.int32)
    out = jax.block_until_ready(
        cw_loss(logits, targets, num_classes=num_classes, margin=margin))
    ref = _cw_loss_ref(logits, targets, num_classes=num_classes, margin=margin)
    assert jnp.allclose(out, ref, atol=1e-5, rtol=1e-5), (out, ref)

    # 2) Multi-tile path with a partial last tile (forced small tile_b).
    batch2 = 300
    logits2 = jax.random.normal(k3, (batch2, num_classes), dtype=jnp.float32) * 5.0
    targets2 = jax.random.randint(k4, (batch2,), 0, num_classes, dtype=jnp.int32)
    out2 = jax.block_until_ready(
        cw_loss(logits2, targets2, num_classes=num_classes, margin=margin,
                tile_b=64))
    ref2 = _cw_loss_ref(logits2, targets2, num_classes=num_classes, margin=margin)
    assert jnp.allclose(out2, ref2, atol=1e-3, rtol=1e-5), (out2, ref2)

    # 3) bf16 inputs: native-dtype (no wrapper cast) path.
    logits_bf16 = logits2.astype(jnp.bfloat16)
    out3 = jax.block_until_ready(
        cw_loss(logits_bf16, targets2, num_classes=num_classes, margin=margin,
                tile_b=64))
    ref3 = _cw_loss_ref(logits_bf16.astype(jnp.float32), targets2,
                        num_classes=num_classes, margin=margin)
    assert jnp.allclose(out3, ref3, atol=1e-3, rtol=1e-3), (out3, ref3)

    # 4) Unreduced (reduce=False) per-sample path, multi-tile with partial tile.
    out4 = jax.block_until_ready(
        cw_loss(logits2, targets2, num_classes=num_classes, margin=margin,
                reduce=False, tile_b=64))
    ref4 = _cw_loss_ref(logits2, targets2, num_classes=num_classes,
                        margin=margin, reduce=False)
    assert out4.shape == (batch2,), out4.shape
    assert jnp.allclose(out4, ref4, atol=1e-5, rtol=1e-5), (out4, ref4)

    print("KERNEL_OK")
</pallas_src>

<mosaic_0001>
module attributes {stable_mosaic.version = 11 : i64} {
  func.func @_cw_loss_mean_kernel(%arg0: i32, %arg1: memref<8x10xf32, #tpu.memory_space<vmem>>, %arg2: memref<8x1xi32, #tpu.memory_space<vmem>>, %arg3: memref<1x1xf32, #tpu.memory_space<vmem>>, %arg4: memref<1x1xf32, #tpu.memory_space<vmem>>) attributes {dimension_semantics = [#tpu.dimension_semantics<arbitrary>], iteration_bounds = array<i64: 1>, scalar_prefetch = 0 : i64, scratch_operands = 1 : i64, tpu.core_type = #tpu.core_type<tc>, window_params = [{transform_indices = @transform_0, window_bounds = array<i64: 8, 10>}, {transform_indices = @transform_1, window_bounds = array<i64: 8, 1>}, {pipeline_mode = #tpu.pipeline_mode<synchronous>, transform_indices = @transform_2, window_bounds = array<i64: 1, 1>}]} {
    %c0_i32 = arith.constant 0 : i32
    %0 = arith.cmpi eq, %arg0, %c0_i32 : i32
    %1 = arith.extui %0 : i1 to i32
    %c0_i32_0 = arith.constant 0 : i32
    %2 = arith.cmpi ne, %1, %c0_i32_0 : i32
    scf.if %2 {
      %cst_17 = arith.constant 0.000000e+00 : f32
      %31 = vector.broadcast %cst_17 : f32 to vector<1x1xf32>
      %c0_18 = arith.constant 0 : index
      %c0_19 = arith.constant 0 : index
      %32 = vector.load %arg4[%c0_18, %c0_19] : memref<1x1xf32, #tpu.memory_space<vmem>>, vector<1x1xf32>
      tpu.vector_store %arg4[%c0_18, %c0_19], %31 {strides = array<i32>} : memref<1x1xf32, #tpu.memory_space<vmem>>, vector<1x1xf32>,
    } else {
    }
    %c0 = arith.constant 0 : index
    %c0_1 = arith.constant 0 : index
    %3 = vector.load %arg1[%c0, %c0_1] : memref<8x10xf32, #tpu.memory_space<vmem>>, vector<8x10xf32>
    %c0_2 = arith.constant 0 : index
    %c0_3 = arith.constant 0 : index
    %4 = vector.load %arg2[%c0_2, %c0_3] : memref<8x1xi32, #tpu.memory_space<vmem>>, vector<8x1xi32>
    %5 = tpu.iota {dimensions = array<i32: 1>} : vector<8x10xi32>
    %6 = vector.broadcast %4 : vector<8x1xi32> to vector<8x10xi32>
    %7 = arith.cmpi eq, %5, %6 : vector<8x10xi32>
    %cst = arith.constant 0.000000e+00 : f32
    %8 = vector.broadcast %cst : f32 to vector<8x10xf32>
    %9 = arith.select %7, %3, %8 : vector<8x10xi1>, vector<8x10xf32>
    %cst_4 = arith.constant dense<0.000000e+00> : vector<8xf32>
    %10 = vector.multi_reduction <add>, %9, %cst_4 [1] : vector<8x10xf32> to vector<8xf32>
    %11 = vector.shape_cast %10 : vector<8xf32> to vector<8x1xf32>
    %cst_5 = arith.constant -1.000000e+03 : f32
    %12 = vector.broadcast %cst_5 : f32 to vector<8x10xf32>
    %13 = arith.select %7, %12, %3 : vector<8x10xi1>, vector<8x10xf32>
    %cst_6 = arith.constant dense<0xFF800000> : vector<8xf32>
    %14 = vector.multi_reduction <maximumf>, %13, %cst_6 [1] : vector<8x10xf32> to vector<8xf32>
    %15 = vector.shape_cast %14 : vector<8xf32> to vector<8x1xf32>
    %16 = arith.subf %11, %15 : vector<8x1xf32>
    %cst_7 = arith.constant 5.000000e+01 : f32
    %17 = vector.broadcast %cst_7 : f32 to vector<8x1xf32>
    %18 = arith.addf %16, %17 : vector<8x1xf32>
    %cst_8 = arith.constant 0.000000e+00 : f32
    %19 = vector.broadcast %cst_8 : f32 to vector<8x1xf32>
    %20 = arith.maximumf %18, %19 : vector<8x1xf32>
    %cst_9 = arith.constant 0.000000e+00 : f32
    %21 = vector.broadcast %cst_9 : f32 to vector<8x1xf32>
    %22 = arith.subf %21, %20 : vector<8x1xf32>
    %c0_10 = arith.constant 0 : index
    %c0_11 = arith.constant 0 : index
    %23 = vector.load %arg4[%c0_10, %c0_11] : memref<1x1xf32, #tpu.memory_space<vmem>>, vector<1x1xf32>
    %cst_12 = arith.constant dense<0.000000e+00> : vector<1xf32>
    %24 = vector.multi_reduction <add>, %22, %cst_12 [0] : vector<8x1xf32> to vector<1xf32>
    %25 = vector.shape_cast %24 : vector<1xf32> to vector<1x1xf32>
    %26 = arith.addf %23, %25 : vector<1x1xf32>
    %c0_13 = arith.constant 0 : index
    %c0_14 = arith.constant 0 : index
    %27 = vector.load %arg4[%c0_13, %c0_14] : memref<1x1xf32, #tpu.memory_space<vmem>>, vector<1x1xf32>
    tpu.vector_store %arg4[%c0_13, %c0_14], %26 {strides = array<i32>} : memref<1x1xf32, #tpu.memory_space<vmem>>, vector<1x1xf32>,
    %c0_i32_15 = arith.constant 0 : i32
    %28 = arith.cmpi eq, %arg0, %c0_i32_15 : i32
    %29 = arith.extui %28 : i1 to i32
    %c0_i32_16 = arith.constant 0 : i32
    %30 = arith.cmpi ne, %29, %c0_i32_16 : i32
    scf.if %30 {
      %c0_17 = arith.constant 0 : index
      %c0_18 = arith.constant 0 : index
      %31 = vector.load %arg4[%c0_17, %c0_18] : memref<1x1xf32, #tpu.memory_space<vmem>>, vector<1x1xf32>
      %cst_19 = arith.constant 1.250000e-01 : f32
      %32 = vector.broadcast %cst_19 : f32 to vector<1x1xf32>
      %33 = arith.mulf %31, %32 : vector<1x1xf32>
      %c0_20 = arith.constant 0 : index
      %c0_21 = arith.constant 0 : index
      %34 = vector.load %arg3[%c0_20, %c0_21] : memref<1x1xf32, #tpu.memory_space<vmem>>, vector<1x1xf32>
      tpu.vector_store %arg3[%c0_20, %c0_21], %33 {strides = array<i32>} : memref<1x1xf32, #tpu.memory_space<vmem>>, vector<1x1xf32>,
    } else {
    }
    return
  }
  func.func @transform_0(%arg0: i32) -> (i32, i32) {
    %c0_i32 = arith.constant 0 : i32
    %c0_i32_0 = arith.constant 0 : i32
    return %arg0, %c0_i32 : i32, i32
  }
  func.func @transform_1(%arg0: i32) -> (i32, i32) {
    %c0_i32 = arith.constant 0 : i32
    %c0_i32_0 = arith.constant 0 : i32
    return %arg0, %c0_i32 : i32, i32
  }
  func.func @transform_2(%arg0: i32) -> (i32, i32) {
    %c0_i32 = arith.constant 0 : i32
    %c0_i32_0 = arith.constant 0 : i32
    %c0_i32_1 = arith.constant 0 : i32
    return %c0_i32, %c0_i32_0 : i32, i32
  }
}

</mosaic_0001>

<bundles_post_ra>
// kernel: tpu_custom_call.1
= control target key start
LH: loop header
LB: loop body
LE: loop exit
PB: predicated region body
PF: predicated region fallthrough
CT: control target
= control target key end

     0   :  { %s136_s0 = inlined_call_operand.vmem [shape: f32[8,10], index: 0, kind: input, shape index: {}]   ;;  %s137_s1 = inlined_call_operand.vmem [shape: s32[8,1], index: 1, kind: input, shape index: {}]   ;;  %s138_s2 = inlined_call_operand.hbm [shape: f32[1,1], index: 2, kind: output, shape index: {}]  }
   0x1   :  { %v19_v0 = vld [vmem:[%s137_s1] sm:$0xff] }
   0x2   :  { %7 = vsyncpa [#allocation4], 0  ;;  %v97_v1 = vmov 0   ;;  %v20_v2 = vlaneseq  ;;  %v18_v4 = vld [vmem:[%s136_s0] sm:$0xff]  ;;  %vm27_vm0 = vcmask 80896   ;;  %vm16_vm2 = vcmask 0  }
   0x3   :  { %72 = vset.pattern.permute.xlu0 %v97_v1  ;;  %v98_v10 = vmov 0.0   ;;  %s99_s0 = smov [#allocation3]  }
   0x4   :  { %23 = vperm.xlu0 %72, %v19_v0   ;;  %v21_v3 = vand.u32 127, %v20_v2  ;;  %17 = vst.msk [vmem:[#allocation2] sm:$0x1] %vm16_vm2, %v98_v10  ;;  %s61_s1 = sshll.u32 %s99_s0, 4  ;;  %s62_s1 = int_to_ptr.vmem [resolvable:$true] %s61_s1 }
   0x5   :  { %s73_s13 = scalar_lea.vmem %s62_s1, 16  ;;  %s77_s14 = scalar_lea.vmem %s62_s1, 32 }
   0x6   :  { %p74_p0 = scmp.ne.s32.totalorder %s62_s1, %s73_s13  ;;  %p78_p1 = scmp.lt.s32.totalorder %s62_s1, %s62_s1 }
   0x7   :  { %p79_p2 = scmp.lt.s32.totalorder %s77_s14, %s73_s13 }
   0x9   :  { %p80_p3 = por %p79_p2, %p78_p1 }
   0xb   :  { %v39_v22 = vld [vmem:[#allocation2] sm:$0x1]  ;;  %p81_p4 = pnand %p80_p3, %p74_p0 }
  0x83   :  { %v24_v5 = vpop.permute.xlu0 %23 }
  0x84   :  { %vm25_vm1 = vcmp.eq.s32.totalorder %v21_v3, %v24_v5 }
  0x85   :  { %v31_v6 = vsel %vm25_vm1, -1000.0, %v18_v4  ;;  %v26_v7 = vsel %vm25_vm1, %v18_v4, 0.0 }
  0x86   :  { %v32_v8 = vsel %vm27_vm0, %v31_v6, -inf  ;;  %v28_v9 = vsel %vm27_vm0, %v26_v7, 0.0 }
  0x87   :  { %33 = vmax.xlane.f32.xlu1 %v32_v8  ;;  %29 = vadd.xlane.f32.xlu0 %v28_v9 }
 0x114   :  { %v34_v11 = vpop.xlane.xlu1 %33  ;;  %v30_v12 = vpop.xlane.xlu0 %29 }
 0x115   :  { %v35_v13 = vsub.f32 %v30_v12, %v34_v11 }
 0x117   :  { %v36_v14 = vadd.f32 50.0, %v35_v13 }
 0x119   :  { %v37_v15 = vmax.f32 %v36_v14, 0.0 }
 0x11b   :  { %v38_v16 = vsub.f32 0.0, %v37_v15 }
 0x11d   :  { %v40_v17 = vrot.slane %v38_v16, 4 }
 0x11f   :  { %v41_v18 = vadd.f32 %v40_v17, %v38_v16 }
 0x121   :  { %v42_v19 = vrot.slane %v41_v18, 2 }
 0x123   :  { %v43_v20 = vadd.f32 %v42_v19, %v41_v18 }
 0x125   :  { %v44_v21 = vrot.slane %v43_v20, 1 }
 0x127   :  { %v45_v23 = vadd.f32 %v44_v21, %v43_v20 }
 0x129   :  { %v46_v24 = vadd.f32 %v45_v23, %v39_v22 }
 0x12b   :  { %48 = vst.msk [vmem:[#allocation2] sm:$0x1] %vm16_vm2, %v46_v24 }
 0x132   :  { %v52_v25 = vld [vmem:[#allocation2] sm:$0x1] }
 0x133   :  { %v53_v26 = vmul.f32 0.125, %v52_v25 }
 0x135   :  { %54 = vst.msk [vmem:[#allocation3] sm:$0x1] %vm16_vm2, %v53_v26 }
 0x136   :  { %84 = shalt.err (!%p81_p4)
}
 0x137   :  { %s85_s17 = scalar_lea.hbm %s138_s2, 16 }
 0x138   :  { %p86_p5 = scmp.ne.s32.totalorder %s138_s2, %s85_s17  ;;  %p89_p6 = scmp.lt.u32.totalorder %s85_s17, %s138_s2 }
 0x13a   :  { %p91_p7 = pnand %p89_p6, %p86_p5 }
 0x13c   :  { %94 = shalt.err (!%p91_p7)
}
 0x13d   :  { %64 = dma.vmem_to_hbm [thread:$0]  %s62_s1, 16, %s138_s2, [#allocation4]  }
 0x13e   :  { %95 = dma.done.wait [#allocation4], 16  }
 0x13f   :  { %96 = vsyncadd [#allocation4], 4294967280 }
 0x140   :  { %68 = vsyncpa [#allocation4], 1 }

</bundles_post_ra>
